<compile_context>
chip_gen: v7x
topology: tpu7x:2x2x1
jax: 0.10.0
libtpu: 0.0.40
codegen_flags: <defaults>
</compile_context>

<pallas_src>
from functools import partial

import jax
import jax.numpy as jnp
from jax.experimental import pallas as pl
from jax.experimental.pallas import tpu as pltpu


def _round_up(x, m):
    return ((x + m - 1) // m) * m


def _mlp_kernel(d_ref, w1_ref, b1_ref, w2_ref, b2_ref, out_ref):
    # fc_1: (TB, C) @ (C, H_pad) + (1, H_pad), f32 accumulation on the MXU.
    h = jnp.dot(d_ref[...], w1_ref[...], preferred_element_type=jnp.float32)
    h = h + b1_ref[...]
    # LeakyReLU(negative_slope=0.1): max(h, 0.1*h) == where(h>0, h, 0.1*h).
    h = jnp.maximum(h, 0.1 * h)
    # fc_2: (TB, H_pad) @ (H_pad, N_pad) + (1, N_pad).  h stays f32 (no cast).
    o = jnp.dot(h, w2_ref[...], preferred_element_type=jnp.float32)
    o = o + b2_ref[...]
    out_ref[...] = o.astype(out_ref.dtype)


def prepare_params(w1_t, b1, w2_t, b2):
    """Pad weights/biases to 128-lane feature dims ONCE, outside the hot path.

    w1_t: (context_size, hidden_dim)  -- fc_1.weight.T
    b1:   (1, hidden_dim)
    w2_t: (hidden_dim, n2)            -- fc_2.weight.T
    b2:   (1, n2)
    Zero padding keeps the real region numerically identical.
    """
    C, H = w1_t.shape
    N = w2_t.shape[1]
    H_pad = _round_up(H, 128)
    N_pad = _round_up(N, 128)
    w1p = jnp.pad(w1_t, ((0, 0), (0, H_pad - H)))
    b1p = jnp.pad(b1, ((0, 0), (0, H_pad - H)))
    w2p = jnp.pad(w2_t, ((0, H_pad - H), (0, N_pad - N)))
    b2p = jnp.pad(b2, ((0, 0), (0, N_pad - N)))
    return w1p, b1p, w2p, b2p


@partial(jax.jit, static_argnames=("n_out",))
def cvx_shortest_path_net_forward(d, w1p, b1p, w2p, b2p, *, n_out):
    """Eval-mode forward: fc_2(leaky_relu(fc_1(d))).

    d:     (B, context_size)                 -- NOT padded on the feature dim
    w1p:   (context_size, H_pad)             -- pre-padded fc_1.weight.T
    b1p:   (1, H_pad)
    w2p:   (H_pad, N_pad)                    -- pre-padded fc_2.weight.T
    b2p:   (1, N_pad)
    n_out: true n2 (static)
    returns: (B, n_out)
    """
    B, C = d.shape
    H_pad = w1p.shape[1]
    N_pad = w2p.shape[1]

    # ---- batch tiling ------------------------------------------------------
    B8 = _round_up(B, 8)
    if B8 <= 8:
        num_tiles = 1
    else:
        # >= 2 grid steps so v7x's two TensorCores both get work (no-op cost
        # on v5e/v6e since each tile stays large); <= 1024 rows per tile.
        num_tiles = max(2, pl.cdiv(B8, 1024))
    TB = _round_up(pl.cdiv(B8, num_tiles), 8)     # rows per tile (mult. of 8)
    B_pad = _round_up(B8, TB)                     # waste < TB, typically < 8 rows
    grid = (B_pad // TB,)

    # Only the batch dim of d is padded (context dim stays native width).
    dp = jnp.pad(d, ((0, B_pad - B), (0, 0)))

    cost = pl.CostEstimate(
        flops=2 * B_pad * (C * H_pad + H_pad * N_pad),
        transcendentals=0,
        bytes_accessed=4 * (B_pad * C + C * H_pad + H_pad
                            + H_pad * N_pad + N_pad + B_pad * N_pad),
    )

    # True VMEM need: double-buffered d/out tiles, resident weights/biases
    # (conservatively counted double-buffered), plus the (TB, H_pad) hidden
    # intermediate.  2x headroom + 2 MiB covers Mosaic internal scratch.
    vmem_bytes = 4 * (2 * TB * C + 2 * TB * N_pad + TB * H_pad
                      + 2 * (C * H_pad + H_pad + H_pad * N_pad + N_pad))
    vmem_limit = min(64 * 1024 * 1024, 2 * vmem_bytes + 2 * 1024 * 1024)

    out_padded = pl.pallas_call(
        _mlp_kernel,
        out_shape=jax.ShapeDtypeStruct((B_pad, N_pad), d.dtype),
        grid_spec=pltpu.PrefetchScalarGridSpec(
            num_scalar_prefetch=0,
            grid=grid,
            in_specs=[
                pl.BlockSpec((TB, C), lambda i: (i, 0)),          # d tile (C unpadded)
                pl.BlockSpec((C, H_pad), lambda i: (0, 0)),       # fc_1 W.T (resident)
                pl.BlockSpec((1, H_pad), lambda i: (0, 0)),       # fc_1 bias
                pl.BlockSpec((H_pad, N_pad), lambda i: (0, 0)),   # fc_2 W.T (resident)
                pl.BlockSpec((1, N_pad), lambda i: (0, 0)),       # fc_2 bias
            ],
            out_specs=pl.BlockSpec((TB, N_pad), lambda i: (i, 0)),  # lane-dense store
        ),
        compiler_params=pltpu.CompilerParams(
            dimension_semantics=("parallel",),   # batch sharded across TCs on v7x
            vmem_limit_bytes=int(vmem_limit),
        ),
        cost_estimate=cost,
    )(dp, w1p, b1p, w2p, b2p)

    # Slice the padded result back to the real (B, n2) region.
    return out_padded[:B, :n_out]


def _linear_init(key, fan_in, fan_out):
    """Deterministic PyTorch-style nn.Linear init: U(-1/sqrt(fan_in), 1/sqrt(fan_in))."""
    kw, kb = jax.random.split(key)
    bound = 1.0 / jnp.sqrt(jnp.float32(fan_in))
    # store weight already transposed: (fan_in, fan_out)
    w_t = jax.random.uniform(kw, (fan_in, fan_out), jnp.float32, -bound, bound)
    b = jax.random.uniform(kb, (1, fan_out), jnp.float32, -bound, bound)
    return w_t, b


if __name__ == "__main__":
    key = jax.random.PRNGKey(0)
    k_d, k_fc1, k_fc2, k_A, k_b = jax.random.split(key, 5)

    # Small, forward-consistent shapes.
    batch = 2
    grid_size = 5
    context_size = 8
    hidden_dim = 10 * context_size          # 80
    n1 = grid_size * grid_size              # 25 nodes (rows of A)
    n2 = 2 * grid_size * (grid_size - 1)    # 40 grid edges (cols of A)

    # Constraint data A (n1, n2), b (n1,) — only used by the cvxpy training
    # branch; initialized deterministically for completeness.
    A = jax.random.normal(k_A, (n1, n2), jnp.float32)
    b_vec = jax.random.normal(k_b, (n1,), jnp.float32)
    # TODO(synk): training-mode branch (CvxpyLayer QP solve over A x == b, x >= 0)
    # has no Pallas equivalent; only the eval-mode path (the MLP producing w)
    # is implemented as a kernel.

    # Parameters (fc_1: context -> hidden, fc_2: hidden -> n2).
    w1_t, b1 = _linear_init(k_fc1, context_size, hidden_dim)
    w2_t, b2 = _linear_init(k_fc2, hidden_dim, n2)

    # Pad the params ONCE, outside the per-call path.
    w1p, b1p, w2p, b2p = prepare_params(w1_t, b1, w2_t, b2)
    (w1p, b1p, w2p, b2p) = jax.block_until_ready((w1p, b1p, w2p, b2p))

    # Input context d: (batch, context_size).
    d = jax.random.normal(k_d, (batch, context_size), jnp.float32)

    out = cvx_shortest_path_net_forward(d, w1p, b1p, w2p, b2p, n_out=n2)
    jax.block_until_ready(out)

    # Reference check in plain JAX (same semantics as PyTorch eval forward).
    h_ref = d @ w1_t + b1
    h_ref = jnp.where(h_ref > 0, h_ref, 0.1 * h_ref)
    ref = h_ref @ w2_t + b2
    assert out.shape == (batch, n2)
    assert jnp.allclose(out, ref, atol=1e-5, rtol=1e-5)

    print("KERNEL_OK")
</pallas_src>

<mosaic_0001>
module attributes {stable_mosaic.version = 11 : i64} {
  func.func @_mlp_kernel(%arg0: i32, %arg1: memref<8x8xf32, #tpu.memory_space<vmem>>, %arg2: memref<8x128xf32, #tpu.memory_space<vmem>>, %arg3: memref<1x128xf32, #tpu.memory_space<vmem>>, %arg4: memref<128x128xf32, #tpu.memory_space<vmem>>, %arg5: memref<1x128xf32, #tpu.memory_space<vmem>>, %arg6: memref<8x128xf32, #tpu.memory_space<vmem>>) attributes {dimension_semantics = [#tpu.dimension_semantics<parallel>], iteration_bounds = array<i64: 1>, scalar_prefetch = 0 : i64, scratch_operands = 0 : i64, tpu.core_type = #tpu.core_type<tc>, window_params = [{transform_indices = @transform_0, window_bounds = array<i64: 8, 8>}, {pipeline_mode = #tpu.pipeline_mode<synchronous>, transform_indices = @transform_1, window_bounds = array<i64: 8, 128>}, {pipeline_mode = #tpu.pipeline_mode<synchronous>, transform_indices = @transform_2, window_bounds = array<i64: 1, 128>}, {pipeline_mode = #tpu.pipeline_mode<synchronous>, transform_indices = @transform_3, window_bounds = array<i64: 128, 128>}, {pipeline_mode = #tpu.pipeline_mode<synchronous>, transform_indices = @transform_4, window_bounds = array<i64: 1, 128>}, {transform_indices = @transform_5, window_bounds = array<i64: 8, 128>}]} {
    %c0 = arith.constant 0 : index
    %c0_0 = arith.constant 0 : index
    %0 = vector.load %arg1[%c0, %c0_0] : memref<8x8xf32, #tpu.memory_space<vmem>>, vector<8x8xf32>
    %c0_1 = arith.constant 0 : index
    %c0_2 = arith.constant 0 : index
    %1 = vector.load %arg2[%c0_1, %c0_2] : memref<8x128xf32, #tpu.memory_space<vmem>>, vector<8x128xf32>
    %cst = arith.constant dense<0.000000e+00> : vector<8x128xf32>
    %2 = tpu.matmul %0, %1, %cst {dimension_numbers = #tpu.dot_dimension_numbers<[1], [0], [0], [1], [0, 0, 1, 1], [], []>} : vector<8x8xf32>, vector<8x128xf32>, vector<8x128xf32> -> vector<8x128xf32>
    %c0_3 = arith.constant 0 : index
    %c0_4 = arith.constant 0 : index
    %3 = vector.load %arg3[%c0_3, %c0_4] : memref<1x128xf32, #tpu.memory_space<vmem>>, vector<1x128xf32>
    %4 = vector.broadcast %3 : vector<1x128xf32> to vector<8x128xf32>
    %5 = arith.addf %2, %4 : vector<8x128xf32>
    %cst_5 = arith.constant 1.000000e-01 : f32
    %6 = vector.broadcast %cst_5 : f32 to vector<8x128xf32>
    %7 = arith.mulf %6, %5 : vector<8x128xf32>
    %8 = arith.maximumf %5, %7 : vector<8x128xf32>
    %c0_6 = arith.constant 0 : index
    %c0_7 = arith.constant 0 : index
    %9 = vector.load %arg4[%c0_6, %c0_7] : memref<128x128xf32, #tpu.memory_space<vmem>>, vector<128x128xf32>
    %cst_8 = arith.constant dense<0.000000e+00> : vector<8x128xf32>
    %10 = tpu.matmul %8, %9, %cst_8 {dimension_numbers = #tpu.dot_dimension_numbers<[1], [0], [0], [1], [0, 0, 1, 1], [], []>} : vector<8x128xf32>, vector<128x128xf32>, vector<8x128xf32> -> vector<8x128xf32>
    %c0_9 = arith.constant 0 : index
    %c0_10 = arith.constant 0 : index
    %11 = vector.load %arg5[%c0_9, %c0_10] : memref<1x128xf32, #tpu.memory_space<vmem>>, vector<1x128xf32>
    %12 = vector.broadcast %11 : vector<1x128xf32> to vector<8x128xf32>
    %13 = arith.addf %10, %12 : vector<8x128xf32>
    %c0_11 = arith.constant 0 : index
    %c0_12 = arith.constant 0 : index
    %14 = vector.load %arg6[%c0_11, %c0_12] : memref<8x128xf32, #tpu.memory_space<vmem>>, vector<8x128xf32>
    tpu.vector_store %arg6[%c0_11, %c0_12], %13 {strides = array<i32>} : memref<8x128xf32, #tpu.memory_space<vmem>>, vector<8x128xf32>,
    return
  }
  func.func @transform_0(%arg0: i32) -> (i32, i32) {
    %c0_i32 = arith.constant 0 : i32
    %c0_i32_0 = arith.constant 0 : i32
    return %arg0, %c0_i32 : i32, i32
  }
  func.func @transform_1(%arg0: i32) -> (i32, i32) {
    %c0_i32 = arith.constant 0 : i32
    %c0_i32_0 = arith.constant 0 : i32
    %c0_i32_1 = arith.constant 0 : i32
    return %c0_i32, %c0_i32_0 : i32, i32
  }
  func.func @transform_2(%arg0: i32) -> (i32, i32) {
    %c0_i32 = arith.constant 0 : i32
    %c0_i32_0 = arith.constant 0 : i32
    %c0_i32_1 = arith.constant 0 : i32
    return %c0_i32, %c0_i32_0 : i32, i32
  }
  func.func @transform_3(%arg0: i32) -> (i32, i32) {
    %c0_i32 = arith.constant 0 : i32
    %c0_i32_0 = arith.constant 0 : i32
    %c0_i32_1 = arith.constant 0 : i32
    return %c0_i32, %c0_i32_0 : i32, i32
  }
  func.func @transform_4(%arg0: i32) -> (i32, i32) {
    %c0_i32 = arith.constant 0 : i32
    %c0_i32_0 = arith.constant 0 : i32
    %c0_i32_1 = arith.constant 0 : i32
    return %c0_i32, %c0_i32_0 : i32, i32
  }
  func.func @transform_5(%arg0: i32) -> (i32, i32) {
    %c0_i32 = arith.constant 0 : i32
    %c0_i32_0 = arith.constant 0 : i32
    return %arg0, %c0_i32 : i32, i32
  }
}

</mosaic_0001>

<bundles_post_ra>
// kernel: cvx_shortest_path_net_forward.1
= control target key start
LH: loop header
LB: loop body
LE: loop exit
PB: predicated region body
PF: predicated region fallthrough
CT: control target
= control target key end

     0   :  { %10 = vsyncpa [#allocation3], 0  ;;  %s334_s18 = smov [#allocation2]   ;;  %s397_s0 = inlined_call_operand.vmem [shape: f32[8,8], index: 0, kind: input, shape index: {}]   ;;  %s398_s1 = inlined_call_operand.vmem [shape: f32[8,128], index: 1, kind: input, shape index: {}]   ;;  %s399_s2 = inlined_call_operand.vmem [shape: f32[1,128], index: 2, kind: input, shape index: {}]   ;;  %s400_s3 = inlined_call_operand.hbm [shape: f32[128,128], index: 3, kind: input, shape index: {}]   ;;  %s401_s4 = inlined_call_operand.vmem [shape: f32[1,128], index: 4, kind: input, shape index: {}]   ;;  %s402_s5 = inlined_call_operand.vmem [shape: f32[8,128], index: 5, kind: output, shape index: {}]  }
   0x1   :  { %s22_s19 = sshll.u32 %s334_s18, 4  ;;  %s310_s22 = scalar_lea.hbm %s400_s3, 2048  ;;  %s23_s19 = int_to_ptr.vmem [resolvable:$true] %s22_s19 }
   0x2   :  { %p311_p0 = scmp.ne.s32.totalorder %s400_s3, %s310_s22  ;;  %p314_p1 = scmp.lt.u32.totalorder %s310_s22, %s400_s3 }
   0x4   :  { %p316_p2 = pnand %p314_p1, %p311_p0 }
   0x6   :  { %319 = shalt.err (!%p316_p2)
}
   0x7   :  { %s320_s27 = scalar_lea.vmem %s23_s19, 2048  ;;  %p325_p4 = scmp.lt.s32.totalorder %s23_s19, %s23_s19 }
   0x8   :  { %p321_p3 = scmp.ne.s32.totalorder %s23_s19, %s320_s27  ;;  %p326_p5 = scmp.lt.s32.totalorder %s320_s27, %s320_s27 }
   0xa   :  { %p327_p6 = por %p326_p5, %p325_p4 }
   0xc   :  { %p328_p7 = pnand %p327_p6, %p321_p3 }
   0xe   :  { %331 = shalt.err (!%p328_p7)
}
   0xf   :  { %s335_s28 = smov 128   ;;  %s336_s29 = smov 8  }
  0x10   :  { %28 = dma.hbm_to_vmem [thread:$0]  %s400_s3, 2048, %s23_s19, [#allocation3], %s335_s28, %s335_s28, %s336_s29  }
  0x11   :  { %332 = dma.done.wait [#allocation3], 2048  }
  0x12   :  { %333 = vsyncadd [#allocation3], 4294965248  ;;  %v337_v0 = vmov 0.0   ;;  %vm338_vm0 = vmmov 0   ;;  %v339_v1 = vmov 0.0|0.0   ;;  %vm43_vm1 = vcmask 64512  }
  0x13   :  { %240 = vmatprep.subr.mxu0 %v337_v0  ;;  %242 = vmatprep.mubr.msk.f32.mxu0 %vm338_vm0, %v337_v0  ;;  %v35_v2 = vld [vmem:[%s398_s1] sm:$0xff]  ;;  %v119_v4 = vld [vmem:[#allocation2] sm:$0xff]  ;;  %v120_v5 = vld [vmem:[#allocation2 + $0x8] sm:$0xff] }
  0x14   :  { %280 = vmatprep.subr.bf16.mxu1 %v339_v1  ;;  %277 = vmatprep.mubr.msk.f32.mxu1 %vm338_vm0, %v337_v0  ;;  %v34_v3 = vld [vmem:[%s397_s0] sm:$0xff]  ;;  %v121_v6 = vld [vmem:[#allocation2 + $0x10] sm:$0xff]  ;;  %v281_v8 = vpack.c.bf16 %v120_v5, %v119_v4  ;;  %v123_v10 = vld [vmem:[#allocation2 + $0x20] sm:$0xff] }
  0x15   :  { %241 = vmatpush3.msra.mxu0 %v35_v2  ;;  %v122_v7 = vld [vmem:[#allocation2 + $0x18] sm:$0xff]  ;;  %v124_v11 = vld [vmem:[#allocation2 + $0x28] sm:$0xff]  ;;  %v125_v13 = vld [vmem:[#allocation2 + $0x30] sm:$0xff] }
  0x16   :  { %243 = vmatmul.mubr.msk.f32.vlgmr.msra.gmra.mrb[0].mxu0 %vm43_vm1, %v34_v3  ;;  %282 = vmatpush3.bf16.msra.mxu1 %v281_v8  ;;  %v284_v9 = vpack.c.bf16 %v122_v7, %v121_v6  ;;  %v287_v12 = vpack.c.bf16 %v124_v11, %v123_v10  ;;  %v126_v14 = vld [vmem:[#allocation2 + $0x38] sm:$0xff]  ;;  %v127_v16 = vld [vmem:[#allocation2 + $0x40] sm:$0xff]  ;;  %v128_v17 = vld [vmem:[#allocation2 + $0x48] sm:$0xff] }
  0x17   :  { %283 = vmatprep.subr.bf16.mxu1 %v339_v1  ;;  %v290_v15 = vpack.c.bf16 %v126_v14, %v125_v13  ;;  %v293_v18 = vpack.c.bf16 %v128_v17, %v127_v16  ;;  %v129_v19 = vld [vmem:[#allocation2 + $0x50] sm:$0xff]  ;;  %v130_v20 = vld [vmem:[#allocation2 + $0x58] sm:$0xff]  ;;  %v131_v22 = vld [vmem:[#allocation2 + $0x60] sm:$0xff] }
  0x18   :  { %v296_v21 = vpack.c.bf16 %v130_v20, %v129_v19  ;;  %v132_v23 = vld [vmem:[#allocation2 + $0x68] sm:$0xff]  ;;  %v133_v25 = vld [vmem:[#allocation2 + $0x70] sm:$0xff]  ;;  %v134_v26 = vld [vmem:[#allocation2 + $0x78] sm:$0xff] }
  0x19   :  { %v299_v24 = vpack.c.bf16 %v132_v23, %v131_v22  ;;  %v302_v27 = vpack.c.bf16 %v134_v26, %v133_v25  ;;  %v218_v28 = vld [vmem:[%s399_s2] ss:$0 sm:$0xff] }
  0x1a   :  { %285 = vmatpush3.bf16.msra.mxu1 %v284_v9  ;;  %v220_v34 = vld [vmem:[%s401_s4] ss:$0 sm:$0xff] }
  0x1b   :  { %286 = vmatprep.subr.bf16.mxu1 %v339_v1 }
  0x1e   :  { %288 = vmatpush3.bf16.msra.mxu1 %v287_v12 }
  0x1f   :  { %289 = vmatprep.subr.bf16.mxu1 %v339_v1 }
  0x22   :  { %291 = vmatpush3.bf16.msra.mxu1 %v290_v15 }
  0x23   :  { %292 = vmatprep.subr.bf16.mxu1 %v339_v1 }
  0x26   :  { %294 = vmatpush3.bf16.msra.mxu1 %v293_v18 }
  0x27   :  { %295 = vmatprep.subr.bf16.mxu1 %v339_v1 }
  0x2a   :  { %297 = vmatpush3.bf16.msra.mxu1 %v296_v21 }
  0x2b   :  { %298 = vmatprep.subr.bf16.mxu1 %v339_v1 }
  0x2e   :  { %300 = vmatpush3.bf16.msra.mxu1 %v299_v24 }
  0x2f   :  { %301 = vmatprep.subr.bf16.mxu1 %v339_v1 }
  0x32   :  { %303 = vmatpush3.bf16.msra.mxu1 %v302_v27 }
  0xe9   :  { %v113_v29 = vpop.f32.mrb[0].mxu0 }
  0xea   :  { %v114_v30 = vadd.f32 %v218_v28, %v113_v29  ;;  %v244_v31 = vpop.f32.mrb[1].mxu0 }
  0xec   :  { %v117_v32 = vmul.f32 0.1, %v114_v30 }
  0xee   :  { %v118_v33 = vmax.f32 %v114_v30, %v117_v32 }
  0xf0   :  { %278 = vmatmul.mubr.f32.vlgmr.msra.gmra.mrb[0].mxu1 %v118_v33 }
 0x1c3   :  { %v208_v35 = vpop.f32.mrb[0].mxu1 }
 0x1c4   :  { %v209_v36 = vadd.f32 %v220_v34, %v208_v35  ;;  %v279_v37 = vpop.f32.mrb[1].mxu1 }
 0x1c6   :  { %212 = vst [vmem:[%s402_s5] sm:$0xff] %v209_v36 }
 0x1c7   :  { %217 = vsyncpa [#allocation3], 1 }

</bundles_post_ra>
